<compile_context>
chip_gen: v7x
topology: tpu7x:2x2x1
jax: 0.10.0
libtpu: 0.0.40
codegen_flags: <defaults>
</compile_context>

<pallas_src>
import jax
import jax.numpy as jnp
from jax.experimental import pallas as pl
from jax.experimental.pallas import tpu as pltpu


_ACC_W = 512                   # f32 accumulator lane width (decoupled from DMA tile)
_TARGET_TILE_BYTES = 4 << 20   # ~4 MiB DMA payload per grid step
_VMEM_BUDGET = 24 << 20        # conservative: fits v7x (64 MiB VMEM) and scoped defaults
_MAX_ROW_BLOCK = 512           # sublane-aligned row block cap (multiple of 8)


def _choose_tiling(rows, hw, itemsize):
    """Pick (row_block, tile_hw, acc_w, needs_tail_mask)."""
    row_block = rows if rows <= _MAX_ROW_BLOCK else _MAX_ROW_BLOCK

    # Single full-extent spatial block if it already fits the DMA target and
    # the VMEM budget -> no tail mask anywhere.
    acc_w_full = min(_ACC_W, hw)
    full_bytes = row_block * hw * itemsize
    scratch_full = 2 * row_block * acc_w_full * 4
    if full_bytes <= _TARGET_TILE_BYTES and 2 * full_bytes + scratch_full <= _VMEM_BUDGET:
        return row_block, hw, acc_w_full, False

    acc_w = _ACC_W
    scratch = 2 * row_block * acc_w * 4
    by_target = _TARGET_TILE_BYTES // (row_block * itemsize)
    by_budget = (_VMEM_BUDGET - scratch) // (2 * row_block * itemsize)
    tile_hw = int(min(hw, by_target, by_budget))
    tile_hw = max(acc_w, (tile_hw // acc_w) * acc_w)   # multiple of acc_w, >= acc_w
    needs_tail_mask = (hw % tile_hw) != 0
    return row_block, tile_hw, acc_w, needs_tail_mask


def _make_pool_kernel(hw, tile_hw, acc_w, needs_tail_mask):
    n_chunks = tile_hw // acc_w
    rem = tile_hw % acc_w          # only possible in the single full-extent block case
    inv_hw = 1.0 / float(hw)

    def kernel(x_ref, pooled_ref, max_acc, sum_acc):
        s = pl.program_id(1)
        n_s = pl.num_programs(1)

        @pl.when(s == 0)
        def _init():
            max_acc[...] = jnp.full(max_acc.shape, -jnp.inf, dtype=max_acc.dtype)
            sum_acc[...] = jnp.zeros(sum_acc.shape, dtype=sum_acc.dtype)

        def accumulate(masked):
            def chunk(start, width):
                x = x_ref[:, start:start + width].astype(jnp.float32)
                if masked:
                    lane = jax.lax.broadcasted_iota(jnp.int32, x.shape, 1)
                    valid = (s * tile_hw + start + lane) < hw
                    x_max = jnp.where(valid, x, -jnp.inf)
                    x_sum = jnp.where(valid, x, 0.0)
                else:
                    x_max = x
                    x_sum = x
                max_acc[:, :width] = jnp.maximum(max_acc[:, :width], x_max)
                sum_acc[:, :width] = sum_acc[:, :width] + x_sum

            for j in range(n_chunks):          # short static unrolled fold
                chunk(j * acc_w, acc_w)
            if rem:
                chunk(n_chunks * acc_w, rem)

        if needs_tail_mask:
            # Steady state: pure cast + max + add (no iota / select).
            @pl.when(s < n_s - 1)
            def _steady():
                accumulate(masked=False)

            # Tail tile only: neutralize out-of-range lanes (-inf / 0).
            @pl.when(s == n_s - 1)
            def _tail():
                accumulate(masked=True)
        else:
            accumulate(masked=False)

        @pl.when(s == n_s - 1)
        def _finalize():
            gmp = jnp.max(max_acc[...], axis=-1, keepdims=True)           # (rb, 1)
            gap = jnp.sum(sum_acc[...], axis=-1, keepdims=True) * inv_hw  # (rb, 1)
            pooled_ref[...] = gmp + gap

    return kernel


def _global_max_plus_avg_pool(x2d):
    """x2d: (rows, hw) native dtype -> (rows, 1) f32 with max + mean per row."""
    rows, hw = x2d.shape
    itemsize = jnp.dtype(x2d.dtype).itemsize
    row_block, tile_hw, acc_w, needs_tail_mask = _choose_tiling(rows, hw, itemsize)
    num_row_blocks = pl.cdiv(rows, row_block)
    num_hw_tiles = pl.cdiv(hw, tile_hw)

    kernel = _make_pool_kernel(hw, tile_hw, acc_w, needs_tail_mask)

    cost = pl.CostEstimate(
        flops=2 * rows * hw,
        transcendentals=0,
        bytes_accessed=rows * hw * itemsize + rows * 4,
    )

    return pl.pallas_call(
        kernel,
        out_shape=jax.ShapeDtypeStruct((rows, 1), jnp.float32),
        grid_spec=pltpu.PrefetchScalarGridSpec(
            num_scalar_prefetch=0,
            grid=(num_row_blocks, num_hw_tiles),
            in_specs=[pl.BlockSpec((row_block, tile_hw), lambda r, s: (r, s))],
            out_specs=pl.BlockSpec((row_block, 1), lambda r, s: (r, 0)),
            scratch_shapes=[
                pltpu.VMEM((row_block, acc_w), jnp.float32),   # running max
                pltpu.VMEM((row_block, acc_w), jnp.float32),   # running sum
            ],
        ),
        compiler_params=pltpu.CompilerParams(
            dimension_semantics=("parallel", "arbitrary"),     # rows || , hw reduce
            vmem_limit_bytes=32 * 1024 * 1024,
        ),
        cost_estimate=cost,
    )(x2d)


def ccem_forward(x, conv_w, conv_b):
    """x: (B, C_in, H, W) NCHW (any float dtype).
    conv_w: (C_out, C_in, 1, 1). conv_b: (C_out,)."""
    B, C_in, H, W = x.shape
    C_out = conv_w.shape[0]
    rows = B * C_in
    hw = H * W

    x2d = x.reshape(rows, hw)                              # free metadata reshape
    pooled = _global_max_plus_avg_pool(x2d).reshape(B, C_in)   # gmp(x) + gap(x)

    # 1x1 conv + BatchNorm epilogue: O(B*C_in*C_out) FLOPs -> plain XLA.
    w_mat = conv_w.reshape(C_out, C_in).astype(jnp.float32)
    a = pooled @ w_mat.T + conv_b.astype(jnp.float32).reshape(1, C_out)   # (B, C_out)

    # BatchNorm2d, training mode: biased batch stats over N (H=W=1), gamma=1, beta=0.
    mean = jnp.mean(a, axis=0, keepdims=True)
    diff = a - mean
    var = jnp.mean(diff * diff, axis=0, keepdims=True)
    bn = diff * jax.lax.rsqrt(var + 1e-5)

    a4 = a.reshape(B, C_out, 1, 1)
    bn4 = bn.reshape(B, C_out, 1, 1)
    # TODO(synk): BatchNorm2d running_mean/running_var buffer updates (a module
    # side effect, not part of the returned value) are not produced.
    return (tuple(a4.shape), tuple(bn4.shape)), (a4, bn4)


if __name__ == "__main__":
    key = jax.random.PRNGKey(0)
    kx, kw, kb = jax.random.split(key, 3)

    B, C_in, C_out, H, W = 2, 4, 8, 16, 16

    x = jax.random.normal(kx, (B, C_in, H, W), dtype=jnp.float32)
    conv_w = jax.random.normal(kw, (C_out, C_in, 1, 1), dtype=jnp.float32) * 0.1
    conv_b = jax.random.normal(kb, (C_out,), dtype=jnp.float32) * 0.1

    shapes, (a, bn) = ccem_forward(x, conv_w, conv_b)
    jax.block_until_ready(a)
    jax.block_until_ready(bn)

    # Pure-JAX reference for the full forward (pool -> conv -> train-mode BN).
    xf = x.reshape(B, C_in, -1)
    pooled_ref = jnp.max(xf, axis=-1) + jnp.mean(xf, axis=-1)
    a_ref = pooled_ref @ conv_w.reshape(C_out, C_in).T + conv_b
    m = a_ref.mean(axis=0, keepdims=True)
    v = ((a_ref - m) ** 2).mean(axis=0, keepdims=True)
    bn_ref = (a_ref - m) * jax.lax.rsqrt(v + 1e-5)

    assert shapes == ((B, C_out, 1, 1), (B, C_out, 1, 1)), shapes
    assert bool(jnp.allclose(a.reshape(B, C_out), a_ref, atol=1e-4, rtol=1e-4))
    assert bool(jnp.allclose(bn.reshape(B, C_out), bn_ref, atol=1e-4, rtol=1e-4))
    print("KERNEL_OK")
</pallas_src>

<mosaic_0001>
module attributes {stable_mosaic.version = 11 : i64} {
  func.func @kernel(%arg0: i32, %arg1: i32, %arg2: memref<8x256xf32, #tpu.memory_space<vmem>>, %arg3: memref<8x1xf32, #tpu.memory_space<vmem>>, %arg4: memref<8x256xf32, #tpu.memory_space<vmem>>, %arg5: memref<8x256xf32, #tpu.memory_space<vmem>>) attributes {dimension_semantics = [#tpu.dimension_semantics<parallel>, #tpu.dimension_semantics<arbitrary>], iteration_bounds = array<i64: 1, 1>, scalar_prefetch = 0 : i64, scratch_operands = 2 : i64, tpu.core_type = #tpu.core_type<tc>, window_params = [{transform_indices = @transform_0, window_bounds = array<i64: 8, 256>}, {transform_indices = @transform_1, window_bounds = array<i64: 8, 1>}]} {
    %c0_i32 = arith.constant 0 : i32
    %0 = arith.cmpi eq, %arg1, %c0_i32 : i32
    %1 = arith.extui %0 : i1 to i32
    %c0_i32_0 = arith.constant 0 : i32
    %2 = arith.cmpi ne, %1, %c0_i32_0 : i32
    scf.if %2 {
      %cst = arith.constant 0xFF800000 : f32
      %13 = vector.broadcast %cst : f32 to vector<8x256xf32>
      %c0_12 = arith.constant 0 : index
      %c0_13 = arith.constant 0 : index
      %14 = vector.load %arg4[%c0_12, %c0_13] : memref<8x256xf32, #tpu.memory_space<vmem>>, vector<8x256xf32>
      tpu.vector_store %arg4[%c0_12, %c0_13], %13 {strides = array<i32>} : memref<8x256xf32, #tpu.memory_space<vmem>>, vector<8x256xf32>,
      %cst_14 = arith.constant 0.000000e+00 : f32
      %15 = vector.broadcast %cst_14 : f32 to vector<8x256xf32>
      %c0_15 = arith.constant 0 : index
      %c0_16 = arith.constant 0 : index
      %16 = vector.load %arg5[%c0_15, %c0_16] : memref<8x256xf32, #tpu.memory_space<vmem>>, vector<8x256xf32>
      tpu.vector_store %arg5[%c0_15, %c0_16], %15 {strides = array<i32>} : memref<8x256xf32, #tpu.memory_space<vmem>>, vector<8x256xf32>,
    } else {
    }
    %c0 = arith.constant 0 : index
    %c0_1 = arith.constant 0 : index
    %3 = vector.load %arg2[%c0, %c0_1] : memref<8x256xf32, #tpu.memory_space<vmem>>, vector<8x256xf32>
    %c0_2 = arith.constant 0 : index
    %c0_3 = arith.constant 0 : index
    %4 = vector.load %arg4[%c0_2, %c0_3] : memref<8x256xf32, #tpu.memory_space<vmem>>, vector<8x256xf32>
    %5 = arith.maximumf %4, %3 : vector<8x256xf32>
    %c0_4 = arith.constant 0 : index
    %c0_5 = arith.constant 0 : index
    %6 = vector.load %arg4[%c0_4, %c0_5] : memref<8x256xf32, #tpu.memory_space<vmem>>, vector<8x256xf32>
    tpu.vector_store %arg4[%c0_4, %c0_5], %5 {strides = array<i32>} : memref<8x256xf32, #tpu.memory_space<vmem>>, vector<8x256xf32>,
    %c0_6 = arith.constant 0 : index
    %c0_7 = arith.constant 0 : index
    %7 = vector.load %arg5[%c0_6, %c0_7] : memref<8x256xf32, #tpu.memory_space<vmem>>, vector<8x256xf32>
    %8 = arith.addf %7, %3 : vector<8x256xf32>
    %c0_8 = arith.constant 0 : index
    %c0_9 = arith.constant 0 : index
    %9 = vector.load %arg5[%c0_8, %c0_9] : memref<8x256xf32, #tpu.memory_space<vmem>>, vector<8x256xf32>
    tpu.vector_store %arg5[%c0_8, %c0_9], %8 {strides = array<i32>} : memref<8x256xf32, #tpu.memory_space<vmem>>, vector<8x256xf32>,
    %c0_i32_10 = arith.constant 0 : i32
    %10 = arith.cmpi eq, %arg1, %c0_i32_10 : i32
    %11 = arith.extui %10 : i1 to i32
    %c0_i32_11 = arith.constant 0 : i32
    %12 = arith.cmpi ne, %11, %c0_i32_11 : i32
    scf.if %12 {
      %c0_12 = arith.constant 0 : index
      %c0_13 = arith.constant 0 : index
      %13 = vector.load %arg4[%c0_12, %c0_13] : memref<8x256xf32, #tpu.memory_space<vmem>>, vector<8x256xf32>
      %cst = arith.constant dense<0xFF800000> : vector<8xf32>
      %14 = vector.multi_reduction <maximumf>, %13, %cst [1] : vector<8x256xf32> to vector<8xf32>
      %15 = vector.shape_cast %14 : vector<8xf32> to vector<8x1xf32>
      %c0_14 = arith.constant 0 : index
      %c0_15 = arith.constant 0 : index
      %16 = vector.load %arg5[%c0_14, %c0_15] : memref<8x256xf32, #tpu.memory_space<vmem>>, vector<8x256xf32>
      %cst_16 = arith.constant dense<0.000000e+00> : vector<8xf32>
      %17 = vector.multi_reduction <add>, %16, %cst_16 [1] : vector<8x256xf32> to vector<8xf32>
      %18 = vector.shape_cast %17 : vector<8xf32> to vector<8x1xf32>
      %cst_17 = arith.constant 3.906250e-03 : f32
      %19 = vector.broadcast %cst_17 : f32 to vector<8x1xf32>
      %20 = arith.mulf %18, %19 : vector<8x1xf32>
      %21 = arith.addf %15, %20 : vector<8x1xf32>
      %c0_18 = arith.constant 0 : index
      %c0_19 = arith.constant 0 : index
      %22 = vector.load %arg3[%c0_18, %c0_19] : memref<8x1xf32, #tpu.memory_space<vmem>>, vector<8x1xf32>
      tpu.vector_store %arg3[%c0_18, %c0_19], %21 {strides = array<i32>} : memref<8x1xf32, #tpu.memory_space<vmem>>, vector<8x1xf32>,
    } else {
    }
    return
  }
  func.func @transform_0(%arg0: i32, %arg1: i32) -> (i32, i32) {
    %c0_i32 = arith.constant 0 : i32
    return %arg0, %arg1 : i32, i32
  }
  func.func @transform_1(%arg0: i32, %arg1: i32) -> (i32, i32) {
    %c0_i32 = arith.constant 0 : i32
    %c0_i32_0 = arith.constant 0 : i32
    return %arg0, %c0_i32 : i32, i32
  }
}

</mosaic_0001>

<bundles_post_ra>
// kernel: tpu_custom_call.1
= control target key start
LH: loop header
LB: loop body
LE: loop exit
PB: predicated region body
PF: predicated region fallthrough
CT: control target
= control target key end

     0   :  { %6 = vsyncpa [#allocation5], 0  ;;  %s89_s6 = smov [#allocation4]   ;;  %s115_s0 = inlined_call_operand.hbm [shape: f32[8,256], index: 0, kind: input, shape index: {}]   ;;  %s116_s1 = inlined_call_operand.vmem [shape: f32[8,1], index: 1, kind: output, shape index: {}]  }
   0x1   :  { %s13_s7 = sshll.u32 %s89_s6, 4  ;;  %s65_s10 = scalar_lea.hbm %s115_s0, 256  ;;  %s14_s7 = int_to_ptr.vmem [resolvable:$true] %s13_s7 }
   0x2   :  { %p66_p0 = scmp.ne.s32.totalorder %s115_s0, %s65_s10  ;;  %p69_p1 = scmp.lt.u32.totalorder %s65_s10, %s115_s0 }
   0x4   :  { %p71_p2 = pnand %p69_p1, %p66_p0 }
   0x6   :  { %74 = shalt.err (!%p71_p2)
}
   0x7   :  { %s75_s15 = scalar_lea.vmem %s14_s7, 256  ;;  %p80_p4 = scmp.lt.s32.totalorder %s14_s7, %s14_s7 }
   0x8   :  { %p76_p3 = scmp.ne.s32.totalorder %s14_s7, %s75_s15  ;;  %p81_p5 = scmp.lt.s32.totalorder %s75_s15, %s75_s15 }
   0xa   :  { %p82_p6 = por %p81_p5, %p80_p4 }
   0xc   :  { %p83_p7 = pnand %p82_p6, %p76_p3 }
   0xe   :  { %86 = shalt.err (!%p83_p7)
}
   0xf   :  { %16 = dma.hbm_to_vmem [thread:$0]  %s115_s0, 256, %s14_s7, [#allocation5]  }
  0x10   :  { %87 = dma.done.wait [#allocation5], 256  }
  0x11   :  { %88 = vsyncadd [#allocation5], 4294967040  ;;  %v28_v0 = vld [vmem:[#allocation4] sm:$0xff]  ;;  %v29_v1 = vld [vmem:[#allocation4 + $0x8] sm:$0xff]  ;;  %vm57_vm0 = vcmask 7168  }
  0x12   :  { %v52_v2 = vadd.f32 %v29_v1, %v28_v0  ;;  %v47_v3 = vmax.f32 %v28_v0, %v29_v1 }
  0x14   :  { %53 = vadd.xlane.f32.xlu0 %v52_v2 }
  0x18   :  { %48 = vmax.xlane.f32.xlu0 %v47_v3 }
  0xa1   :  { %v54_v4 = vpop.xlane.xlu0 %53 }
  0xa2   :  { %v55_v5 = vmul.f32 0.00390625, %v54_v4 }
  0xa5   :  { %v49_v6 = vpop.xlane.xlu0 %48 }
  0xa6   :  { %v56_v7 = vadd.f32 %v55_v5, %v49_v6 }
  0xa8   :  { %58 = vst.msk [vmem:[%s116_s1] sm:$0xff] %vm57_vm0, %v56_v7 }
  0xa9   :  { %63 = vsyncpa [#allocation5], 1 }

</bundles_post_ra>
